<compile_context>
chip_gen: v7x
topology: tpu7x:2x2x1
jax: 0.10.0
libtpu: 0.0.40
codegen_flags: <defaults>
</compile_context>

<pallas_src>
import jax
import jax.numpy as jnp
from jax.experimental import pallas as pl
from jax.experimental.pallas import tpu as pltpu


_NEG_LARGE = -1e30   # python float; baked into the padded bias in the wrapper


def _round_up(x, m):
    return (x + m - 1) // m * m


# ----------------------------------------------------------------------------
# Fused MLP kernel (whole network in one pallas_call)
# ----------------------------------------------------------------------------
def _make_mlp_kernel(num_layers):
    """Kernel body: x_ref, w0, b0, w1, b1, ..., w_{L-1}, b_{L-1}, o_ref."""

    def kernel(x_ref, *refs):
        o_ref = refs[-1]
        wb = refs[:-1]

        h = x_ref[...]                                    # bf16 [tm, in]
        # Hidden layers: Linear -> ReLU (dropout = identity in eval mode).
        for i in range(num_layers - 1):
            w = wb[2 * i][...]                            # bf16 [in, out]
            b = wb[2 * i + 1][...]                        # bf16 [1, out]
            y = jnp.dot(h, w, preferred_element_type=jnp.float32) + b
            h = jnp.maximum(y, 0.0).astype(x_ref.dtype)   # back to bf16 for MXU

        # Output layer: Linear -> log_softmax (f32).
        w = wb[-2][...]
        b = wb[-1][...]
        y = jnp.dot(h, w, preferred_element_type=jnp.float32) + b
        # Padded logit lanes already hold ~-1e30 via the bias padding, so no
        # in-kernel masking is needed: exp() underflows to 0 below.
        m = jnp.max(y, axis=-1, keepdims=True)
        s = y - m
        lse = jnp.log(jnp.sum(jnp.exp(s), axis=-1, keepdims=True))
        o_ref[...] = (s - lse).astype(o_ref.dtype)

    return kernel


def _fused_mlp(x_flat, params, num_classes, tile_m=512):
    """Run the whole MLP in a single pallas_call.

    x_flat: [N, input_size] f32.  params: list of (W[in,out], b[out]) f32.
    Returns [N, num_classes] f32 log-probabilities.
    """
    n, input_size = x_flat.shape
    num_layers = len(params)

    # --- batch padding / tiling -------------------------------------------
    # tm is always a multiple of 8 (sublane constraint), capped by tile_m and
    # the padded batch; guarantee >= 2 grid steps for mid/large batches so the
    # "parallel" axis can be split across v7x's two TensorCores.
    tm = max(8, min(_round_up(tile_m, 8), _round_up(n, 8)))
    if n >= 16 and _round_up(n, tm) // tm < 2:
        tm = _round_up(pl.cdiv(_round_up(n, 8), 2), 8)
    m_pad = _round_up(n, tm)

    x_bf = x_flat.astype(jnp.bfloat16)
    if m_pad != n:
        x_bf = jnp.pad(x_bf, ((0, m_pad - n), (0, 0)))

    # --- lane-dense output: pad last layer to a multiple of 128 columns ----
    # Padded weight columns are 0; padded bias entries are -1e30 so the
    # padded logits are ~-1e30 without any in-kernel masking.
    out_pad = _round_up(max(num_classes, 128), 128)
    w_last, b_last = params[-1]
    if out_pad != w_last.shape[1]:
        w_last = jnp.pad(w_last, ((0, 0), (0, out_pad - w_last.shape[1])))
        b_last = jnp.pad(b_last, ((0, out_pad - b_last.shape[0]),),
                         constant_values=_NEG_LARGE)
    params = list(params[:-1]) + [(w_last, b_last)]

    # --- assemble operands & specs (bf16 weights/biases, full-array blocks) --
    operands = [x_bf]
    in_specs = [pl.BlockSpec((tm, input_size), lambda i: (i, 0))]
    for w, b in params:
        w_bf = w.astype(jnp.bfloat16)
        b_bf = b.reshape(1, b.shape[0]).astype(jnp.bfloat16)
        operands.append(w_bf)
        operands.append(b_bf)
        in_specs.append(pl.BlockSpec(w_bf.shape, lambda i: (0, 0)))
        in_specs.append(pl.BlockSpec(b_bf.shape, lambda i: (0, 0)))

    out = pl.pallas_call(
        _make_mlp_kernel(num_layers),
        out_shape=jax.ShapeDtypeStruct((m_pad, out_pad), jnp.float32),
        grid=(m_pad // tm,),
        in_specs=in_specs,
        out_specs=pl.BlockSpec((tm, out_pad), lambda i: (i, 0)),
        compiler_params=pltpu.CompilerParams(
            dimension_semantics=("parallel",),        # batch tiles -> both TCs
            vmem_limit_bytes=32 * 1024 * 1024),       # headroom for big tiles on v5e
    )(*operands)

    return out[:n, :num_classes]


# ----------------------------------------------------------------------------
# Model: parameter init + forward
# ----------------------------------------------------------------------------
def init_params(key, input_size, output_size, hidden_layers):
    """Deterministic init mirroring nn.Linear default (U[-1/sqrt(fan_in), ...])."""
    sizes = [input_size] + list(hidden_layers) + [output_size]
    params = []
    for fan_in, fan_out in zip(sizes[:-1], sizes[1:]):
        key, kw, kb = jax.random.split(key, 3)
        bound = 1.0 / jnp.sqrt(fan_in)
        w = jax.random.uniform(kw, (fan_in, fan_out), jnp.float32, -bound, bound)
        b = jax.random.uniform(kb, (fan_out,), jnp.float32, -bound, bound)
        params.append((w, b))
    return params


def classifier_forward(x, params_flat, num_classes):
    # re-pack flat params: list of (w, b)
    params = [(params_flat[2 * i], params_flat[2 * i + 1])
              for i in range(len(params_flat) // 2)]
    n = x.shape[0]
    h = x.reshape(n, -1)                      # x.view(x.shape[0], -1)
    return _fused_mlp(h, params, num_classes)


classifier_forward_jit = jax.jit(classifier_forward, static_argnums=(2,))


# ----------------------------------------------------------------------------
if __name__ == "__main__":
    # Small shapes consistent with the module: NCHW image -> flattened MLP.
    N, C, H, W = 2, 4, 16, 16
    input_size = C * H * W          # 1024
    hidden_layers = [128, 128]
    output_size = 10

    key = jax.random.PRNGKey(0)
    key, kx = jax.random.split(key)
    x = jax.random.normal(kx, (N, C, H, W), jnp.float32)

    params = init_params(key, input_size, output_size, hidden_layers)
    params_flat = tuple(p for wb in params for p in wb)

    out = classifier_forward_jit(x, params_flat, output_size)
    out = jax.block_until_ready(out)

    # sanity 1: shape + log_softmax rows exponentiate-and-sum to ~1
    row_sums = jnp.sum(jnp.exp(out), axis=1)
    assert out.shape == (N, output_size)
    assert bool(jnp.all(jnp.abs(row_sums - 1.0) < 1e-3))

    # sanity 2: match a pure-JAX f32 reference of the same forward pass.
    # Tolerance is loosened because the kernel runs the matmuls in bf16
    # (f32 accumulation), per the performance guidance.
    def ref_forward(x, params):
        h = x.reshape(x.shape[0], -1)
        for w, b in params[:-1]:
            h = jnp.maximum(h @ w + b, 0.0)
        w, b = params[-1]
        return jax.nn.log_softmax(h @ w + b, axis=-1)

    ref = ref_forward(x, params)
    assert bool(jnp.all(jnp.abs(out - ref) < 1e-1))

    print("KERNEL_OK")
</pallas_src>

<mosaic_0001>
module attributes {stable_mosaic.version = 11 : i64} {
  func.func @kernel(%arg0: i32, %arg1: memref<8x1024xbf16, #tpu.memory_space<vmem>>, %arg2: memref<1024x128xbf16, #tpu.memory_space<vmem>>, %arg3: memref<1x128xbf16, #tpu.memory_space<vmem>>, %arg4: memref<128x128xbf16, #tpu.memory_space<vmem>>, %arg5: memref<1x128xbf16, #tpu.memory_space<vmem>>, %arg6: memref<128x128xbf16, #tpu.memory_space<vmem>>, %arg7: memref<1x128xbf16, #tpu.memory_space<vmem>>, %arg8: memref<8x128xf32, #tpu.memory_space<vmem>>) attributes {dimension_semantics = [#tpu.dimension_semantics<parallel>], iteration_bounds = array<i64: 1>, scalar_prefetch = 0 : i64, scratch_operands = 0 : i64, tpu.core_type = #tpu.core_type<tc>, window_params = [{transform_indices = @transform_0, window_bounds = array<i64: 8, 1024>}, {pipeline_mode = #tpu.pipeline_mode<synchronous>, transform_indices = @transform_1, window_bounds = array<i64: 1024, 128>}, {pipeline_mode = #tpu.pipeline_mode<synchronous>, transform_indices = @transform_2, window_bounds = array<i64: 1, 128>}, {pipeline_mode = #tpu.pipeline_mode<synchronous>, transform_indices = @transform_3, window_bounds = array<i64: 128, 128>}, {pipeline_mode = #tpu.pipeline_mode<synchronous>, transform_indices = @transform_4, window_bounds = array<i64: 1, 128>}, {pipeline_mode = #tpu.pipeline_mode<synchronous>, transform_indices = @transform_5, window_bounds = array<i64: 128, 128>}, {pipeline_mode = #tpu.pipeline_mode<synchronous>, transform_indices = @transform_6, window_bounds = array<i64: 1, 128>}, {transform_indices = @transform_7, window_bounds = array<i64: 8, 128>}]} {
    %c0 = arith.constant 0 : index
    %c0_0 = arith.constant 0 : index
    %0 = vector.load %arg1[%c0, %c0_0] : memref<8x1024xbf16, #tpu.memory_space<vmem>>, vector<8x1024xbf16>
    %c0_1 = arith.constant 0 : index
    %c0_2 = arith.constant 0 : index
    %1 = vector.load %arg2[%c0_1, %c0_2] : memref<1024x128xbf16, #tpu.memory_space<vmem>>, vector<1024x128xbf16>
    %c0_3 = arith.constant 0 : index
    %c0_4 = arith.constant 0 : index
    %2 = vector.load %arg3[%c0_3, %c0_4] : memref<1x128xbf16, #tpu.memory_space<vmem>>, vector<1x128xbf16>
    %cst = arith.constant dense<0.000000e+00> : vector<8x128xf32>
    %3 = tpu.matmul %0, %1, %cst {dimension_numbers = #tpu.dot_dimension_numbers<[1], [0], [0], [1], [0, 0, 1, 1], [], []>} : vector<8x1024xbf16>, vector<1024x128xbf16>, vector<8x128xf32> -> vector<8x128xf32>
    %4 = arith.extf %2 : vector<1x128xbf16> to vector<1x128xf32>
    %5 = vector.broadcast %4 : vector<1x128xf32> to vector<8x128xf32>
    %6 = arith.addf %3, %5 : vector<8x128xf32>
    %cst_5 = arith.constant 0.000000e+00 : f32
    %7 = vector.broadcast %cst_5 : f32 to vector<8x128xf32>
    %8 = arith.maximumf %6, %7 : vector<8x128xf32>
    %9 = arith.truncf %8 : vector<8x128xf32> to vector<8x128xbf16>
    %c0_6 = arith.constant 0 : index
    %c0_7 = arith.constant 0 : index
    %10 = vector.load %arg4[%c0_6, %c0_7] : memref<128x128xbf16, #tpu.memory_space<vmem>>, vector<128x128xbf16>
    %c0_8 = arith.constant 0 : index
    %c0_9 = arith.constant 0 : index
    %11 = vector.load %arg5[%c0_8, %c0_9] : memref<1x128xbf16, #tpu.memory_space<vmem>>, vector<1x128xbf16>
    %cst_10 = arith.constant dense<0.000000e+00> : vector<8x128xf32>
    %12 = tpu.matmul %9, %10, %cst_10 {dimension_numbers = #tpu.dot_dimension_numbers<[1], [0], [0], [1], [0, 0, 1, 1], [], []>} : vector<8x128xbf16>, vector<128x128xbf16>, vector<8x128xf32> -> vector<8x128xf32>
    %13 = arith.extf %11 : vector<1x128xbf16> to vector<1x128xf32>
    %14 = vector.broadcast %13 : vector<1x128xf32> to vector<8x128xf32>
    %15 = arith.addf %12, %14 : vector<8x128xf32>
    %cst_11 = arith.constant 0.000000e+00 : f32
    %16 = vector.broadcast %cst_11 : f32 to vector<8x128xf32>
    %17 = arith.maximumf %15, %16 : vector<8x128xf32>
    %18 = arith.truncf %17 : vector<8x128xf32> to vector<8x128xbf16>
    %c0_12 = arith.constant 0 : index
    %c0_13 = arith.constant 0 : index
    %19 = vector.load %arg6[%c0_12, %c0_13] : memref<128x128xbf16, #tpu.memory_space<vmem>>, vector<128x128xbf16>
    %c0_14 = arith.constant 0 : index
    %c0_15 = arith.constant 0 : index
    %20 = vector.load %arg7[%c0_14, %c0_15] : memref<1x128xbf16, #tpu.memory_space<vmem>>, vector<1x128xbf16>
    %cst_16 = arith.constant dense<0.000000e+00> : vector<8x128xf32>
    %21 = tpu.matmul %18, %19, %cst_16 {dimension_numbers = #tpu.dot_dimension_numbers<[1], [0], [0], [1], [0, 0, 1, 1], [], []>} : vector<8x128xbf16>, vector<128x128xbf16>, vector<8x128xf32> -> vector<8x128xf32>
    %22 = arith.extf %20 : vector<1x128xbf16> to vector<1x128xf32>
    %23 = vector.broadcast %22 : vector<1x128xf32> to vector<8x128xf32>
    %24 = arith.addf %21, %23 : vector<8x128xf32>
    %cst_17 = arith.constant dense<0xFF800000> : vector<8xf32>
    %25 = vector.multi_reduction <maximumf>, %24, %cst_17 [1] : vector<8x128xf32> to vector<8xf32>
    %26 = vector.shape_cast %25 : vector<8xf32> to vector<8x1xf32>
    %27 = vector.broadcast %26 : vector<8x1xf32> to vector<8x128xf32>
    %28 = arith.subf %24, %27 : vector<8x128xf32>
    %29 = math.exp %28 : vector<8x128xf32>
    %cst_18 = arith.constant dense<0.000000e+00> : vector<8xf32>
    %30 = vector.multi_reduction <add>, %29, %cst_18 [1] : vector<8x128xf32> to vector<8xf32>
    %31 = vector.shape_cast %30 : vector<8xf32> to vector<8x1xf32>
    %32 = math.log %31 : vector<8x1xf32>
    %33 = vector.broadcast %32 : vector<8x1xf32> to vector<8x128xf32>
    %34 = arith.subf %28, %33 : vector<8x128xf32>
    %c0_19 = arith.constant 0 : index
    %c0_20 = arith.constant 0 : index
    %35 = vector.load %arg8[%c0_19, %c0_20] : memref<8x128xf32, #tpu.memory_space<vmem>>, vector<8x128xf32>
    tpu.vector_store %arg8[%c0_19, %c0_20], %34 {strides = array<i32>} : memref<8x128xf32, #tpu.memory_space<vmem>>, vector<8x128xf32>,
    return
  }
  func.func @transform_0(%arg0: i32) -> (i32, i32) {
    %c0_i32 = arith.constant 0 : i32
    %c0_i32_0 = arith.constant 0 : i32
    return %arg0, %c0_i32 : i32, i32
  }
  func.func @transform_1(%arg0: i32) -> (i32, i32) {
    %c0_i32 = arith.constant 0 : i32
    %c0_i32_0 = arith.constant 0 : i32
    %c0_i32_1 = arith.constant 0 : i32
    return %c0_i32, %c0_i32_0 : i32, i32
  }
  func.func @transform_2(%arg0: i32) -> (i32, i32) {
    %c0_i32 = arith.constant 0 : i32
    %c0_i32_0 = arith.constant 0 : i32
    %c0_i32_1 = arith.constant 0 : i32
    return %c0_i32, %c0_i32_0 : i32, i32
  }
  func.func @transform_3(%arg0: i32) -> (i32, i32) {
    %c0_i32 = arith.constant 0 : i32
    %c0_i32_0 = arith.constant 0 : i32
    %c0_i32_1 = arith.constant 0 : i32
    return %c0_i32, %c0_i32_0 : i32, i32
  }
  func.func @transform_4(%arg0: i32) -> (i32, i32) {
    %c0_i32 = arith.constant 0 : i32
    %c0_i32_0 = arith.constant 0 : i32
    %c0_i32_1 = arith.constant 0 : i32
    return %c0_i32, %c0_i32_0 : i32, i32
  }
  func.func @transform_5(%arg0: i32) -> (i32, i32) {
    %c0_i32 = arith.constant 0 : i32
    %c0_i32_0 = arith.constant 0 : i32
    %c0_i32_1 = arith.constant 0 : i32
    return %c0_i32, %c0_i32_0 : i32, i32
  }
  func.func @transform_6(%arg0: i32) -> (i32, i32) {
    %c0_i32 = arith.constant 0 : i32
    %c0_i32_0 = arith.constant 0 : i32
    %c0_i32_1 = arith.constant 0 : i32
    return %c0_i32, %c0_i32_0 : i32, i32
  }
  func.func @transform_7(%arg0: i32) -> (i32, i32) {
    %c0_i32 = arith.constant 0 : i32
    %c0_i32_0 = arith.constant 0 : i32
    return %arg0, %c0_i32 : i32, i32
  }
}

</mosaic_0001>

<bundles_post_ra>
// kernel: classifier_forward.1
= control target key start
LH: loop header
LB: loop body
LE: loop exit
PB: predicated region body
PF: predicated region fallthrough
CT: control target
= control target key end

     0   :  { %vm1305_vm0 = vmmov 0   ;;  %s1628_s1 = inlined_call_operand.vmem [shape: bf16[1024,128], index: 1, kind: input, shape index: {}]   ;;  %s1629_s0 = inlined_call_operand.vmem [shape: bf16[8,1024], index: 0, kind: input, shape index: {}]   ;;  %s1630_s3 = inlined_call_operand.vmem [shape: bf16[128,128], index: 3, kind: input, shape index: {}]   ;;  %s1631_s5 = inlined_call_operand.vmem [shape: bf16[128,128], index: 5, kind: input, shape index: {}]   ;;  %s1632_s2 = inlined_call_operand.vmem [shape: bf16[1,128], index: 2, kind: input, shape index: {}]   ;;  %s1633_s4 = inlined_call_operand.vmem [shape: bf16[1,128], index: 4, kind: input, shape index: {}]   ;;  %s1634_s6 = inlined_call_operand.vmem [shape: bf16[1,128], index: 6, kind: input, shape index: {}]   ;;  %s1635_s7 = inlined_call_operand.vmem [shape: f32[8,128], index: 7, kind: output, shape index: {}]  }
   0x1   :  { %v1212_v0 = vld [vmem:[%s1628_s1 + $0x40] sm:$0xff]   ;;  %v1216_v4 = vld [vmem:[%s1628_s1 + $0x48] sm:$0xff]   ;;  %v1220_v8 = vld [vmem:[%s1628_s1 + $0x50] sm:$0xff]  }
   0x2   :  { %v1213_v1 = vld [vmem:[%s1628_s1 + $0xc0] sm:$0xff]   ;;  %1064 = vmatprep.subr.bf16.mxu0 %v1212_v0  ;;  %v1217_v5 = vld [vmem:[%s1628_s1 + $0xc8] sm:$0xff]   ;;  %v1221_v9 = vld [vmem:[%s1628_s1 + $0xd0] sm:$0xff]  }
   0x3   :  { %v1214_v2 = vld [vmem:[%s1628_s1] sm:$0xff]   ;;  %1086 = vmatprep.subr.bf16.mxu1 %v1213_v1  ;;  %v1218_v6 = vld [vmem:[%s1628_s1 + $0x8] sm:$0xff]   ;;  %v1222_v10 = vld [vmem:[%s1628_s1 + $0x10] sm:$0xff]  }
   0x4   :  { %v1215_v3 = vld [vmem:[%s1628_s1 + $0x80] sm:$0xff]   ;;  %1065 = vmatpush3.bf16.msra.mxu0 %v1214_v2  ;;  %v1219_v7 = vld [vmem:[%s1628_s1 + $0x88] sm:$0xff]   ;;  %v1223_v11 = vld [vmem:[%s1628_s1 + $0x90] sm:$0xff]  }
   0x5   :  { %1087 = vmatpush3.bf16.msra.mxu1 %v1215_v3  ;;  %1066 = vmatprep.subr.bf16.mxu0 %v1216_v4  ;;  %v1224_v12 = vld [vmem:[%s1628_s1 + $0x58] sm:$0xff]   ;;  %v1228_v16 = vld [vmem:[%s1628_s1 + $0x60] sm:$0xff]   ;;  %v1232_v20 = vld [vmem:[%s1628_s1 + $0x68] sm:$0xff]  }
   0x6   :  { %1088 = vmatprep.subr.bf16.mxu1 %v1217_v5  ;;  %v1225_v13 = vld [vmem:[%s1628_s1 + $0xd8] sm:$0xff]   ;;  %v1229_v17 = vld [vmem:[%s1628_s1 + $0xe0] sm:$0xff]   ;;  %v1233_v21 = vld [vmem:[%s1628_s1 + $0xe8] sm:$0xff]  }
   0x7   :  { %v1226_v14 = vld [vmem:[%s1628_s1 + $0x18] sm:$0xff]   ;;  %v1230_v18 = vld [vmem:[%s1628_s1 + $0x20] sm:$0xff]   ;;  %v1234_v22 = vld [vmem:[%s1628_s1 + $0x28] sm:$0xff]  }
   0x8   :  { %1067 = vmatpush3.bf16.msra.mxu0 %v1218_v6  ;;  %v1227_v15 = vld [vmem:[%s1628_s1 + $0x98] sm:$0xff]   ;;  %v1231_v19 = vld [vmem:[%s1628_s1 + $0xa0] sm:$0xff]   ;;  %v1235_v23 = vld [vmem:[%s1628_s1 + $0xa8] sm:$0xff]  }
   0x9   :  { %1089 = vmatpush3.bf16.msra.mxu1 %v1219_v7  ;;  %1068 = vmatprep.subr.bf16.mxu0 %v1220_v8  ;;  %v1236_v24 = vld [vmem:[%s1628_s1 + $0x70] sm:$0xff]   ;;  %v1240_v28 = vld [vmem:[%s1628_s1 + $0x78] sm:$0xff]   ;;  %v27_v32 = vld [vmem:[%s1629_s0] sm:$0xff] }
   0xa   :  { %1090 = vmatprep.subr.bf16.mxu1 %v1221_v9  ;;  %v1237_v25 = vld [vmem:[%s1628_s1 + $0xf0] sm:$0xff]   ;;  %v1241_v29 = vld [vmem:[%s1628_s1 + $0xf8] sm:$0xff]   ;;  %v28_v33 = vld [vmem:[%s1629_s0 + $0x8] sm:$0xff]  ;;  %v976_v34 = vcombine.low %v27_v32, %v27_v32  ;;  %v977_v35 = vcombine.high %v27_v32, %v27_v32 }
   0xb   :  { %v1238_v26 = vld [vmem:[%s1628_s1 + $0x30] sm:$0xff]   ;;  %v1242_v30 = vld [vmem:[%s1628_s1 + $0x38] sm:$0xff]   ;;  %v978_v36 = vcombine.low %v28_v33, %v28_v33  ;;  %v979_v37 = vcombine.high %v28_v33, %v28_v33  ;;  %v1248_v38 = vld [vmem:[%s1628_s1 + $0x140] sm:$0xff]  }
   0xc   :  { %1069 = vmatpush3.bf16.msra.mxu0 %v1222_v10  ;;  %v1239_v27 = vld [vmem:[%s1628_s1 + $0xb0] sm:$0xff]   ;;  %v1243_v31 = vld [vmem:[%s1628_s1 + $0xb8] sm:$0xff]   ;;  %v1249_v39 = vld [vmem:[%s1628_s1 + $0x1c0] sm:$0xff]   ;;  %609 = vmatprep.mubr.bf16.mxu0 %v977_v35 }
   0xd   :  { %1091 = vmatpush3.bf16.msra.mxu1 %v1223_v11  ;;  %1070 = vmatprep.subr.bf16.mxu0 %v1224_v12  ;;  %v1250_v40 = vld [vmem:[%s1628_s1 + $0x100] sm:$0xff]   ;;  %v1252_v42 = vld [vmem:[%s1628_s1 + $0x148] sm:$0xff]   ;;  %v1256_v46 = vld [vmem:[%s1628_s1 + $0x150] sm:$0xff]   ;;  %v1304_v12 = vmov 0.0  }
   0xe   :  { %1092 = vmatprep.subr.bf16.mxu1 %v1225_v13  ;;  %649 = vmatprep.mubr.bf16.mxu1 %v979_v37  ;;  %v1251_v41 = vld [vmem:[%s1628_s1 + $0x180] sm:$0xff]   ;;  %v1253_v43 = vld [vmem:[%s1628_s1 + $0x1c8] sm:$0xff]   ;;  %v1257_v47 = vld [vmem:[%s1628_s1 + $0x1d0] sm:$0xff]  }
   0xf   :  { %v1254_v44 = vld [vmem:[%s1628_s1 + $0x108] sm:$0xff]   ;;  %v1258_v48 = vld [vmem:[%s1628_s1 + $0x110] sm:$0xff]   ;;  %v1260_v50 = vld [vmem:[%s1628_s1 + $0x158] sm:$0xff]  }
  0x10   :  { %1071 = vmatpush3.bf16.msra.mxu0 %v1226_v14  ;;  %v1255_v45 = vld [vmem:[%s1628_s1 + $0x188] sm:$0xff]   ;;  %v1259_v49 = vld [vmem:[%s1628_s1 + $0x190] sm:$0xff]   ;;  %v1261_v51 = vld [vmem:[%s1628_s1 + $0x1d8] sm:$0xff]  }
  0x11   :  { %1093 = vmatpush3.bf16.msra.mxu1 %v1227_v15  ;;  %1072 = vmatprep.subr.bf16.mxu0 %v1228_v16  ;;  %v1262_v52 = vld [vmem:[%s1628_s1 + $0x118] sm:$0xff]   ;;  %v1264_v54 = vld [vmem:[%s1628_s1 + $0x160] sm:$0xff]   ;;  %v1268_v58 = vld [vmem:[%s1628_s1 + $0x168] sm:$0xff]  }
  0x12   :  { %1094 = vmatprep.subr.bf16.mxu1 %v1229_v17  ;;  %v1263_v53 = vld [vmem:[%s1628_s1 + $0x198] sm:$0xff]   ;;  %v1265_v55 = vld [vmem:[%s1628_s1 + $0x1e0] sm:$0xff]   ;;  %v1269_v59 = vld [vmem:[%s1628_s1 + $0x1e8] sm:$0xff]  }
  0x13   :  { %v1266_v56 = vld [vmem:[%s1628_s1 + $0x120] sm:$0xff]   ;;  %v1270_v60 = vld [vmem:[%s1628_s1 + $0x128] sm:$0xff]   ;;  %v1272_v62 = vld [vmem:[%s1628_s1 + $0x170] sm:$0xff]  }
  0x14   :  { %1073 = vmatpush3.bf16.msra.mxu0 %v1230_v18  ;;  %v1267_v57 = vld [vmem:[%s1628_s1 + $0x1a0] sm:$0xff]   ;;  %v1271_v61 = vld [vmem:[%s1628_s1 + $0x1a8] sm:$0xff]   ;;  %v1273_v63 = vld [vmem:[%s1628_s1 + $0x1f0] sm:$0xff]  }
  0x15   :  { %1095 = vmatpush3.bf16.msra.mxu1 %v1231_v19  ;;  %1074 = vmatprep.subr.bf16.mxu0 %v1232_v20  ;;  %v1274_v0 = vld [vmem:[%s1628_s1 + $0x130] sm:$0xff]   ;;  %v1276_v2 = vld [vmem:[%s1628_s1 + $0x178] sm:$0xff]   ;;  %v1284_v13 = vld [vmem:[%s1630_s3] sm:$0xff]  }
  0x16   :  { %1096 = vmatprep.subr.bf16.mxu1 %v1233_v21  ;;  %v1275_v1 = vld [vmem:[%s1628_s1 + $0x1b0] sm:$0xff]   ;;  %v1277_v3 = vld [vmem:[%s1628_s1 + $0x1f8] sm:$0xff]   ;;  %v1285_v14 = vld [vmem:[%s1630_s3 + $0x8] sm:$0xff]  }
  0x17   :  { %v1278_v4 = vld [vmem:[%s1628_s1 + $0x138] sm:$0xff]   ;;  %v29_v6 = vld [vmem:[%s1629_s0 + $0x10] sm:$0xff]  ;;  %v1288_v17 = vld [vmem:[%s1630_s3 + $0x20] sm:$0xff]  }
  0x18   :  { %1075 = vmatpush3.bf16.msra.mxu0 %v1234_v22  ;;  %v1279_v5 = vld [vmem:[%s1628_s1 + $0x1b8] sm:$0xff]   ;;  %v980_v7 = vcombine.low %v29_v6, %v29_v6  ;;  %v981_v8 = vcombine.high %v29_v6, %v29_v6  ;;  %v1286_v15 = vld [vmem:[%s1630_s3 + $0x10] sm:$0xff]   ;;  %v1289_v18 = vld [vmem:[%s1630_s3 + $0x28] sm:$0xff]  }
  0x19   :  { %1097 = vmatpush3.bf16.msra.mxu1 %v1235_v23  ;;  %1076 = vmatprep.subr.bf16.mxu0 %v1236_v24  ;;  %v30_v9 = vld [vmem:[%s1629_s0 + $0x18] sm:$0xff]  ;;  %v1290_v19 = vld [vmem:[%s1630_s3 + $0x30] sm:$0xff]   ;;  %v1292_v21 = vld [vmem:[%s1631_s5] sm:$0xff]  }
  0x1a   :  { %1098 = vmatprep.subr.bf16.mxu1 %v1237_v25  ;;  %v982_v10 = vcombine.low %v30_v9, %v30_v9  ;;  %v983_v11 = vcombine.high %v30_v9, %v30_v9  ;;  %v1287_v16 = vld [vmem:[%s1630_s3 + $0x18] sm:$0xff]   ;;  %v1293_v22 = vld [vmem:[%s1631_s5 + $0x8] sm:$0xff]   ;;  %v1294_v23 = vld [vmem:[%s1631_s5 + $0x10] sm:$0xff]  }
  0x1b   :  { %v1291_v20 = vld [vmem:[%s1630_s3 + $0x38] sm:$0xff]   ;;  %v1296_v25 = vld [vmem:[%s1631_s5 + $0x20] sm:$0xff]  }
  0x1c   :  { %1077 = vmatpush3.bf16.msra.mxu0 %v1238_v26  ;;  %v1295_v24 = vld [vmem:[%s1631_s5 + $0x18] sm:$0xff]   ;;  %v1297_v26 = vld [vmem:[%s1631_s5 + $0x28] sm:$0xff]  }
  0x1d   :  { %1099 = vmatpush3.bf16.msra.mxu1 %v1239_v27  ;;  %1078 = vmatprep.subr.bf16.mxu0 %v1240_v28  ;;  %v161_v27 = vlaneseq }
  0x1e   :  { %1100 = vmatprep.subr.bf16.mxu1 %v1241_v29  ;;  %v159_v29 = vld [vmem:[%s1632_s2] sm:$0x1] }
  0x1f   :  { %v162_v28 = vshrl.u32 %v161_v27, 7 }
  0x20   :  { %1079 = vmatpush3.bf16.msra.mxu0 %v1242_v30  ;;  %v160_v30 = vunpack.c.l.bf16 %v159_v29 }
  0x21   :  { %1101 = vmatpush3.bf16.msra.mxu1 %v1243_v31  ;;  %1108 = vmatprep.subr.bf16.mxu0 %v1248_v38  ;;  %v163_v31 = vsub.s32 0, %v162_v28 }
  0x22   :  { %1130 = vmatprep.subr.bf16.mxu1 %v1249_v39 }
  0x23   :  { %610 = vmatmul.mubr.bf16.vlgmr.msra.gmra.mrb[0].mxu0 %v976_v34  ;;  %v164_v34 = vrot.slane %v160_v30, %v163_v31 }
  0x24   :  { %650 = vmatmul.mubr.bf16.vlgmr.msra.gmra.mrb[0].mxu1 %v978_v36  ;;  %1109 = vmatpush3.bf16.msra.mxu0 %v1250_v40 }
  0x25   :  { %1131 = vmatpush3.bf16.msra.mxu1 %v1251_v41  ;;  %1110 = vmatprep.subr.bf16.mxu0 %v1252_v42 }
  0x26   :  { %1132 = vmatprep.subr.bf16.mxu1 %v1253_v43  ;;  %689 = vmatprep.mubr.bf16.mxu0 %v981_v8 }
  0x27   :  { %729 = vmatprep.mubr.bf16.mxu1 %v983_v11 }
  0x28   :  { %1111 = vmatpush3.bf16.msra.mxu0 %v1254_v44 }
  0x29   :  { %1133 = vmatpush3.bf16.msra.mxu1 %v1255_v45  ;;  %1112 = vmatprep.subr.bf16.mxu0 %v1256_v46 }
  0x2a   :  { %1134 = vmatprep.subr.bf16.mxu1 %v1257_v47 }
  0x2c   :  { %1113 = vmatpush3.bf16.msra.mxu0 %v1258_v48 }
  0x2d   :  { %1135 = vmatpush3.bf16.msra.mxu1 %v1259_v49  ;;  %1114 = vmatprep.subr.bf16.mxu0 %v1260_v50 }
  0x2e   :  { %1136 = vmatprep.subr.bf16.mxu1 %v1261_v51 }
  0x30   :  { %1115 = vmatpush3.bf16.msra.mxu0 %v1262_v52 }
  0x31   :  { %1137 = vmatpush3.bf16.msra.mxu1 %v1263_v53  ;;  %1116 = vmatprep.subr.bf16.mxu0 %v1264_v54 }
  0x32   :  { %1138 = vmatprep.subr.bf16.mxu1 %v1265_v55 }
  0x34   :  { %1117 = vmatpush3.bf16.msra.mxu0 %v1266_v56 }
  0x35   :  { %1139 = vmatpush3.bf16.msra.mxu1 %v1267_v57  ;;  %1118 = vmatprep.subr.bf16.mxu0 %v1268_v58 }
  0x36   :  { %1140 = vmatprep.subr.bf16.mxu1 %v1269_v59  ;;  %v1298_v59 = vld [vmem:[%s1631_s5 + $0x30] sm:$0xff]  }
  0x38   :  { %1119 = vmatpush3.bf16.msra.mxu0 %v1270_v60  ;;  %v1299_v60 = vld [vmem:[%s1631_s5 + $0x38] sm:$0xff]  }
  0x39   :  { %1141 = vmatpush3.bf16.msra.mxu1 %v1271_v61  ;;  %1120 = vmatprep.subr.bf16.mxu0 %v1272_v62  ;;  %v755_v61 = vld [vmem:[%s1633_s4] sm:$0x1] }
  0x3a   :  { %1142 = vmatprep.subr.bf16.mxu1 %v1273_v63  ;;  %v756_v62 = vunpack.c.l.bf16 %v755_v61 }
  0x3c   :  { %1121 = vmatpush3.bf16.msra.mxu0 %v1274_v0  ;;  %v760_v63 = vrot.slane %v756_v62, %v163_v31 }
  0x3d   :  { %1143 = vmatpush3.bf16.msra.mxu1 %v1275_v1  ;;  %1122 = vmatprep.subr.bf16.mxu0 %v1276_v2 }
  0x3e   :  { %1144 = vmatprep.subr.bf16.mxu1 %v1277_v3 }
  0x40   :  { %1123 = vmatpush3.bf16.msra.mxu0 %v1278_v4 }
  0x41   :  { %1145 = vmatpush3.bf16.msra.mxu1 %v1279_v5  ;;  %1170 = vmatprep.subr.bf16.mxu0 %v1304_v12 }
  0x42   :  { %1190 = vmatprep.subr.bf16.mxu1 %v1304_v12 }
  0x43   :  { %690 = vmatmul.mubr.bf16.vlgmr.msra.gmra.mrb[4].mxu0 %v980_v7  ;;  %v867_v7 = vld [vmem:[%s1634_s6] sm:$0x1] }
  0x44   :  { %730 = vmatmul.mubr.bf16.vlgmr.msra.gmra.mrb[4].mxu1 %v982_v10  ;;  %1171 = vmatpush3.bf16.msra.mxu0 %v1284_v13  ;;  %v868_v8 = vunpack.c.l.bf16 %v867_v7 }
  0x45   :  { %1172 = vmatprep.subr.bf16.mxu0 %v1304_v12  ;;  %1186 = vmatprep.mubr.msk.bf16.mxu0 %vm1305_vm0, %v1304_v12 }
  0x46   :  { %1206 = vmatprep.mubr.msk.bf16.mxu1 %vm1305_vm0, %v1304_v12  ;;  %1191 = vmatpush3.bf16.msra.mxu1 %v1292_v21  ;;  %v872_v9 = vrot.slane %v868_v8, %v163_v31 }
  0x47   :  { %1192 = vmatprep.subr.bf16.mxu1 %v1304_v12 }
  0x48   :  { %1173 = vmatpush3.bf16.msra.mxu0 %v1285_v14 }
  0x49   :  { %1174 = vmatprep.subr.bf16.mxu0 %v1304_v12 }
  0x4a   :  { %1193 = vmatpush3.bf16.msra.mxu1 %v1293_v22 }
  0x4b   :  { %1194 = vmatprep.subr.bf16.mxu1 %v1304_v12 }
  0x4c   :  { %1175 = vmatpush3.bf16.msra.mxu0 %v1286_v15 }
  0x4d   :  { %1176 = vmatprep.subr.bf16.mxu0 %v1304_v12 }
  0x4e   :  { %1195 = vmatpush3.bf16.msra.mxu1 %v1294_v23 }
  0x4f   :  { %1196 = vmatprep.subr.bf16.mxu1 %v1304_v12 }
  0x50   :  { %1177 = vmatpush3.bf16.msra.mxu0 %v1287_v16 }
  0x51   :  { %1178 = vmatprep.subr.bf16.mxu0 %v1304_v12 }
  0x52   :  { %1197 = vmatpush3.bf16.msra.mxu1 %v1295_v24 }
  0x53   :  { %1198 = vmatprep.subr.bf16.mxu1 %v1304_v12 }
  0x54   :  { %1179 = vmatpush3.bf16.msra.mxu0 %v1288_v17 }
  0x55   :  { %1180 = vmatprep.subr.bf16.mxu0 %v1304_v12 }
  0x56   :  { %1199 = vmatpush3.bf16.msra.mxu1 %v1296_v25 }
  0x57   :  { %1200 = vmatprep.subr.bf16.mxu1 %v1304_v12 }
  0x58   :  { %1181 = vmatpush3.bf16.msra.mxu0 %v1289_v18 }
  0x59   :  { %1182 = vmatprep.subr.bf16.mxu0 %v1304_v12 }
  0x5a   :  { %1201 = vmatpush3.bf16.msra.mxu1 %v1297_v26 }
  0x5b   :  { %1202 = vmatprep.subr.bf16.mxu1 %v1304_v12 }
  0x5c   :  { %1183 = vmatpush3.bf16.msra.mxu0 %v1290_v19 }
  0x5d   :  { %1184 = vmatprep.subr.bf16.mxu0 %v1304_v12 }
  0x5e   :  { %1203 = vmatpush3.bf16.msra.mxu1 %v1298_v59 }
  0x5f   :  { %1204 = vmatprep.subr.bf16.mxu1 %v1304_v12 }
  0x60   :  { %1185 = vmatpush3.bf16.msra.mxu0 %v1291_v20 }
  0x62   :  { %1205 = vmatpush3.bf16.msra.mxu1 %v1299_v60 }
  0xf6   :  { %v1080_v32 = vpop.f32.mrb[0].mxu0 }
  0xf7   :  { %v1102_v33 = vpop.f32.mrb[0].mxu1  ;;  %v1081_v35 = vpop.f32.mrb[1].mxu0 }
  0xf8   :  { %v1103_v36 = vpop.f32.mrb[1].mxu1  ;;  %v1082_v37 = vadd.f32 %v1081_v35, %v1080_v32  ;;  %v1083_v39 = vpop.f32.mrb[2].mxu0 }
  0xf9   :  { %v1104_v38 = vadd.f32 %v1103_v36, %v1102_v33  ;;  %v1105_v40 = vpop.f32.mrb[2].mxu1  ;;  %v1084_v41 = vpop.f32.mrb[3].mxu0 }
  0xfa   :  { %v1106_v42 = vpop.f32.mrb[3].mxu1  ;;  %v612_v43 = vadd.f32 %v1082_v37, %v164_v34 }
  0xfc   :  { %v652_v44 = vadd.f32 %v1104_v38, %v612_v43 }
 0x116   :  { %v1124_v45 = vpop.f32.mrb[4].mxu0 }
 0x117   :  { %v1146_v46 = vpop.f32.mrb[4].mxu1  ;;  %v1125_v47 = vpop.f32.mrb[5].mxu0 }
 0x118   :  { %v1147_v48 = vpop.f32.mrb[5].mxu1  ;;  %v1126_v49 = vadd.f32 %v1125_v47, %v1124_v45  ;;  %v1127_v51 = vpop.f32.mrb[6].mxu0 }
 0x119   :  { %v1148_v50 = vadd.f32 %v1147_v48, %v1146_v46  ;;  %v1149_v52 = vpop.f32.mrb[6].mxu1  ;;  %v1128_v53 = vpop.f32.mrb[7].mxu0 }
 0x11a   :  { %v1150_v54 = vpop.f32.mrb[7].mxu1  ;;  %v692_v55 = vadd.f32 %v1126_v49, %v652_v44 }
 0x11c   :  { %v732_v56 = vadd.f32 %v1148_v50, %v692_v55 }
 0x11e   :  { %v737_v57 = vmax.f32 %v732_v56, 0.0 }
 0x120   :  { %v738_v58 = vpack.c.bf16 %v737_v57, %v737_v57 }
 0x122   :  { %1187 = vmatmul.mubr.bf16.vlgmr.msra.gmra.mrb[8].mxu0 %v738_v58 }
 0x1f5   :  { %v843_v0 = vpop.f32.mrb[8].mxu0 }
 0x1f6   :  { %v844_v1 = vadd.f32 %v843_v0, %v760_v63  ;;  %v1188_v2 = vpop.f32.mrb[9].mxu0 }
 0x1f7   :  { %v846_v3 = vpop.f32.mrb[10].mxu0 }
 0x1f8   :  { %v849_v4 = vmax.f32 %v844_v1, 0.0  ;;  %v1189_v5 = vpop.f32.mrb[11].mxu0 }
 0x1fa   :  { %v850_v6 = vpack.c.bf16 %v849_v4, %v849_v4 }
 0x1fc   :  { %1207 = vmatmul.mubr.bf16.vlgmr.msra.gmra.mrb[8].mxu1 %v850_v6 }
 0x2cf   :  { %v955_v10 = vpop.f32.mrb[8].mxu1 }
 0x2d0   :  { %v956_v11 = vadd.f32 %v955_v10, %v872_v9  ;;  %v1208_v12 = vpop.f32.mrb[9].mxu1 }
 0x2d1   :  { %v958_v13 = vpop.f32.mrb[10].mxu1 }
 0x2d2   :  { %961 = vmax.xlane.f32.xlu0 %v956_v11  ;;  %v1209_v14 = vpop.f32.mrb[11].mxu1 }
 0x35f   :  { %v962_v15 = vpop.xlane.xlu0 %961 }
 0x360   :  { %v963_v16 = vsub.f32 %v956_v11, %v962_v15 }
 0x362   :  { %v964_v17 = vmul.f32 1.442695, %v963_v16 }
 0x364   :  { %1300 = vpow2.f32 %v964_v17 }
 0x36e   :  { %v1301_v18 = vpop.eup %1300 }
 0x36f   :  { %966 = vadd.xlane.f32.xlu0 %v1301_v18 }
 0x3fc   :  { %v967_v19 = vpop.xlane.xlu0 %966 }
 0x3fd   :  { %1302 = vlog2.f32 %v967_v19 }
 0x407   :  { %v1303_v20 = vpop.eup %1302 }
 0x408   :  { %v969_v21 = vmul.f32 0.6931472, %v1303_v20 }
 0x40a   :  { %v970_v22 = vsub.f32 %v963_v16, %v969_v21 }
 0x40c   :  { %971 = vst [vmem:[%s1635_s7] sm:$0xff] %v970_v22 }

</bundles_post_ra>
